<compile_context>
chip_gen: v5e
topology: v5e:2x2
jax: 0.10.0
libtpu: 0.0.40
codegen_flags: <defaults>
</compile_context>

<pallas_src>
import functools

import jax
import jax.numpy as jnp
from jax import lax
from jax.experimental import pallas as pl
from jax.experimental.pallas import tpu as pltpu


def _em_loss_kernel(x_ref, o_ref, *, total_b: int, tile_b: int, need_mask: bool):
    """One batch tile: (tile_b, C) -> (1, 8, C) partial sums of p * log(p)."""
    x = x_ref[...].astype(jnp.float32)                      # (TB, C)
    c = x.shape[-1]

    # Row-wise softmax statistics (classes on the lane axis).
    m = jnp.max(x, axis=1, keepdims=True)                   # (TB, 1)
    xs = x - m
    e = jnp.exp(xs)                                         # (TB, C)
    s = jnp.sum(e, axis=1, keepdims=True)                   # (TB, 1)
    inv_s = pl.reciprocal(s, approx=True)                   # EUP vrcp, (TB, 1)
    log_s = jnp.log(s)                                      # TB logs, not TB*C

    # p * log(p) = (e / s) * (xs - log(s)); underflowed p contributes 0 exactly.
    contrib = (e * inv_s) * (xs - log_s)                    # (TB, C)

    if need_mask:
        row = pl.program_id(0) * tile_b + lax.broadcasted_iota(
            jnp.int32, (tile_b, 1), 0)
        contrib = jnp.where(row < total_b, contrib, 0.0)    # zero padded rows

    # Layout-preserving sublane-group reduction -> lane-dense (8, C) partials.
    partial = jnp.sum(contrib.reshape(tile_b // 8, 8, c), axis=0)
    o_ref[...] = partial.reshape(1, 8, c)


def em_loss_for_target(x: jax.Array) -> jax.Array:
    """Entropy-minimization loss. x: (batch, nClass). Returns f32 scalar."""
    b, c = x.shape

    # Batch-tile rows: multiple of 8, capped at 1024 rows and ~1 MiB per tile so
    # the double-buffered pipeline plus in-kernel temporaries stay far below the
    # smallest scoped-VMEM defaults (16 MiB v5e, 32 MiB v6e/v7x; 64 MiB phys v7x).
    row_bytes = c * 4
    tb = max(8, min(1024, (1 << 20) // row_bytes))
    tb = max(8, (tb // 8) * 8)
    tb = min(tb, ((b + 7) // 8) * 8)          # don't blow tiny batches up to a huge tile
    b_pad = ((b + tb - 1) // tb) * tb
    nt = b_pad // tb
    need_mask = b_pad != b

    x_in = x
    if need_mask:
        x_in = jnp.pad(x, ((0, b_pad - b), (0, 0)))

    kernel = functools.partial(
        _em_loss_kernel, total_b=b, tile_b=tb, need_mask=need_mask)

    partials = pl.pallas_call(
        kernel,
        out_shape=jax.ShapeDtypeStruct((nt, 8, c), jnp.float32),
        grid_spec=pltpu.PrefetchScalarGridSpec(
            num_scalar_prefetch=0,
            grid=(nt,),
            in_specs=[pl.BlockSpec((tb, c), lambda i: (i, 0))],
            out_specs=pl.BlockSpec((1, 8, c), lambda i: (i, 0, 0)),
        ),
        compiler_params=pltpu.CompilerParams(
            dimension_semantics=("parallel",)),
    )(x_in)

    # loss = -(sum over batch of per-row entropy) / TRUE batch size.
    return -jnp.sum(partials) / b


def _reference(x: jax.Array) -> jax.Array:
    p = jax.nn.softmax(x.astype(jnp.float32), axis=1)
    p_safe = jnp.where(p == 0.0, p + 1e-6, p)
    return -jnp.mean(jnp.sum(p * jnp.log(p_safe), axis=1))


if __name__ == "__main__":
    key = jax.random.PRNGKey(0)
    k1, k2 = jax.random.split(key)
    NCLASS = 10

    # Aligned batch (no padding path).
    x = jax.random.normal(k1, (8, NCLASS), dtype=jnp.float32)
    loss = jax.block_until_ready(em_loss_for_target(x))
    ref = jax.block_until_ready(_reference(x))
    # Tolerance accounts for pl.reciprocal(approx=True) in the kernel.
    assert jnp.allclose(loss, ref, rtol=2e-3, atol=1e-4), (loss, ref)

    # Ragged batch (exercises the padded-row mask path).
    x2 = jax.random.normal(k2, (13, NCLASS), dtype=jnp.float32)
    loss2 = jax.block_until_ready(em_loss_for_target(x2))
    ref2 = jax.block_until_ready(_reference(x2))
    assert jnp.allclose(loss2, ref2, rtol=2e-3, atol=1e-4), (loss2, ref2)

    print("KERNEL_OK")
</pallas_src>

<mosaic_0001>
module attributes {stable_mosaic.version = 11 : i64} {
  func.func @_em_loss_kernel(%arg0: i32, %arg1: memref<8x10xf32, #tpu.memory_space<vmem>>, %arg2: memref<1x8x10xf32, #tpu.memory_space<vmem>>) attributes {dimension_semantics = [#tpu.dimension_semantics<parallel>], iteration_bounds = array<i64: 1>, scalar_prefetch = 0 : i64, scratch_operands = 0 : i64, tpu.core_type = #tpu.core_type<tc>, window_params = [{transform_indices = @transform_0, window_bounds = array<i64: 8, 10>}, {transform_indices = @transform_1, window_bounds = array<i64: 1, 8, 10>}]} {
    %c0 = arith.constant 0 : index
    %c0_0 = arith.constant 0 : index
    %0 = vector.load %arg1[%c0, %c0_0] : memref<8x10xf32, #tpu.memory_space<vmem>>, vector<8x10xf32>
    %cst = arith.constant dense<0xFF800000> : vector<8xf32>
    %1 = vector.multi_reduction <maximumf>, %0, %cst [1] : vector<8x10xf32> to vector<8xf32>
    %2 = vector.shape_cast %1 : vector<8xf32> to vector<8x1xf32>
    %3 = vector.broadcast %2 : vector<8x1xf32> to vector<8x10xf32>
    %4 = arith.subf %0, %3 : vector<8x10xf32>
    %5 = math.exp %4 : vector<8x10xf32>
    %cst_1 = arith.constant dense<0.000000e+00> : vector<8xf32>
    %6 = vector.multi_reduction <add>, %5, %cst_1 [1] : vector<8x10xf32> to vector<8xf32>
    %7 = vector.shape_cast %6 : vector<8xf32> to vector<8x1xf32>
    %8 = tpu.reciprocal %7 {approx = true} : vector<8x1xf32> -> vector<8x1xf32>
    %9 = math.log %7 : vector<8x1xf32>
    %10 = vector.broadcast %8 : vector<8x1xf32> to vector<8x10xf32>
    %11 = arith.mulf %5, %10 : vector<8x10xf32>
    %12 = vector.broadcast %9 : vector<8x1xf32> to vector<8x10xf32>
    %13 = arith.subf %4, %12 : vector<8x10xf32>
    %14 = arith.mulf %11, %13 : vector<8x10xf32>
    %15 = vector.shape_cast %14 : vector<8x10xf32> to vector<1x8x10xf32>
    %cst_2 = arith.constant dense<0.000000e+00> : vector<8x10xf32>
    %16 = vector.multi_reduction <add>, %15, %cst_2 [0] : vector<1x8x10xf32> to vector<8x10xf32>
    %17 = vector.shape_cast %16 : vector<8x10xf32> to vector<1x8x10xf32>
    %c0_3 = arith.constant 0 : index
    %c0_4 = arith.constant 0 : index
    %c0_5 = arith.constant 0 : index
    %18 = vector.load %arg2[%c0_3, %c0_4, %c0_5] : memref<1x8x10xf32, #tpu.memory_space<vmem>>, vector<1x8x10xf32>
    tpu.vector_store %arg2[%c0_3, %c0_4, %c0_5], %17 {strides = array<i32>} : memref<1x8x10xf32, #tpu.memory_space<vmem>>, vector<1x8x10xf32>,
    return
  }
  func.func @transform_0(%arg0: i32) -> (i32, i32) {
    %c0_i32 = arith.constant 0 : i32
    %c0_i32_0 = arith.constant 0 : i32
    return %arg0, %c0_i32 : i32, i32
  }
  func.func @transform_1(%arg0: i32) -> (i32, i32, i32) {
    %c0_i32 = arith.constant 0 : i32
    %c0_i32_0 = arith.constant 0 : i32
    %c0_i32_1 = arith.constant 0 : i32
    return %arg0, %c0_i32, %c0_i32_0 : i32, i32, i32
  }
}

</mosaic_0001>

<bundles_post_ra>
// kernel: tpu_custom_call.1
= control target key start
LH: loop header
LB: loop body
LE: loop exit
PB: predicated region body
PF: predicated region fallthrough
CT: control target
= control target key end

     0   :  { %6 = vsyncpa [#allocation3], 0  ;;  %s140_s0 = inlined_call_operand.hbm [shape: f32[8,10], index: 0, kind: input, shape index: {}]   ;;  %s141_s1 = inlined_call_operand.hbm [shape: f32[1,8,10], index: 1, kind: output, shape index: {}]  }
   0x1   :  { %7 = vsyncpa [#allocation4], 0  ;;  %s13_s8 = sshll.u32 %s140_s0, 4  ;;  %s119_s9 = smov [#allocation2]   ;;  %s14_s8 = int_to_ptr.hbm [resolvable:$true] %s13_s8 }
   0x2   :  { %s15_s10 = sshll.u32 %s119_s9, 4  ;;  %s16_s10 = int_to_ptr.vmem [resolvable:$true] %s15_s10 }
   0x3   :  { %18 = dma.hbm_to_vmem [thread:$0]  %s14_s8, 128, %s16_s10, [#allocation3]  }
   0x4   :  { %115 = dma.done.wait [#allocation3], 128  }
   0x5   :  { %116 = vsyncadd [#allocation3], 4294967168  ;;  %vm24_vm0 = vcmask 80896   ;;  %v23_v0 = vld [vmem:[#allocation2] sm:$0xff]  ;;  %s120_s0 = smov [#allocation5]   ;;  %s49_s14 = sshll.u32 %s141_s1, 4  ;;  %s50_s14 = int_to_ptr.hbm [resolvable:$true] %s49_s14 }
   0x6   :  { %v25_v1 = vsel %vm24_vm0, %v23_v0, -inf  ;;  %s47_s11 = sshll.u32 %s120_s0, 4  ;;  %s48_s11 = int_to_ptr.vmem [resolvable:$true] %s47_s11 }
   0x7   :  { %26 = vmax.xlane.f32.xlu0 %v25_v1 }
  0x7a   :  { %v27_v2 = vpop.xlane.xlu0 %26 }
  0x7b   :  { %v28_v3 = vsub.f32 %v23_v0, %v27_v2 }
  0x7d   :  { %v29_v4 = vmul.f32 1.442695, %v28_v3 }
  0x7f   :  { %61 = vpow2.f32 %v29_v4 }
  0x85   :  { %v62_v5 = vpop.eup %61 }
  0x86   :  { %v31_v6 = vsel %vm24_vm0, %v62_v5, 0.0 }
  0x87   :  { %32 = vadd.xlane.f32.xlu0 %v31_v6 }
  0xfa   :  { %v33_v7 = vpop.xlane.xlu0 %32 }
  0xfb   :  { %63 = vrcp.f32 %v33_v7 }
  0xfc   :  { %65 = vlog2.f32 %v33_v7 }
 0x101   :  { %v64_v8 = vpop.eup %63 }
 0x102   :  { %v66_v9 = vpop.eup %65  ;;  %v37_v11 = vmul.f32 %v64_v8, %v62_v5 }
 0x103   :  { %v36_v10 = vmul.f32 0.6931472, %v66_v9 }
 0x105   :  { %v38_v12 = vsub.f32 %v28_v3, %v36_v10 }
 0x107   :  { %v39_v13 = vmul.f32 %v38_v12, %v37_v11 }
 0x109   :  { %41 = vst.msk [vmem:[#allocation5] sm:$0xff] %vm24_vm0, %v39_v13 }
 0x10a   :  { %52 = dma.vmem_to_hbm [thread:$0]  %s48_s11, 128, %s50_s14, [#allocation4]  }
 0x10b   :  { %117 = dma.done.wait [#allocation4], 128  }
 0x10c   :  { %118 = vsyncadd [#allocation4], 4294967168 }
 0x10d   :  { %57 = vsyncpa [#allocation3], 1 }
 0x10e   :  { %58 = vsyncpa [#allocation4], 1 }

</bundles_post_ra>
